<compile_context>
chip_gen: v7x
topology: tpu7x:2x2x1
jax: 0.10.0
libtpu: 0.0.40
codegen_flags: <defaults>
</compile_context>

<pallas_src>
import jax
import jax.numpy as jnp
from jax.experimental import pallas as pl
from jax.experimental.pallas import tpu as pltpu


def bcl_forward(x, conv_w, conv_b, fc_w, fc_b):
    """x: (B, C_in, H, W) NCHW.  conv_w: (C_out, C_in, 3, 3) (PyTorch layout)."""
    B, C_in, H, W = x.shape
    C_mid = conv_w.shape[0]
    NC = fc_w.shape[0]                      # fc_w is PyTorch (out_features, in_features)
    HW = H * W
    M = B * HW                              # one row per valid output pixel
    NC_PAD = 128                            # lane-dense output width
    B_PAD = max(8, ((B + 7) // 8) * 8)      # 8-aligned batch rows for the output slab
    M_PAD = ((M + 7) // 8) * 8              # 8-aligned row count (512 here already)

    assert NC <= NC_PAD, f"num_classes={NC} must be <= {NC_PAD}"

    # ---------------- wrapper-side prep (cheap, lane-dense, 8-aligned) --------
    # im2col: col[b*HW + i*W + j, (ki*3+kj)*C_in + ci] = x_pad[b, ci, i+ki, j+kj]
    xp = jnp.pad(x, ((0, 0), (0, 0), (1, 1), (1, 1)))           # (B, C, H+2, W+2)
    patches = [xp[:, :, ki:ki + H, kj:kj + W]                   # (B, C, H, W) each
               for ki in range(3) for kj in range(3)]
    col = jnp.stack(patches, axis=0)                            # (9, B, C, H, W)
    col = jnp.transpose(col, (1, 3, 4, 0, 2)).reshape(M, 9 * C_in)
    col = col.astype(jnp.float32)
    if M_PAD != M:
        col = jnp.pad(col, ((0, M_PAD - M), (0, 0)))            # zero rows, masked by pool

    # Conv weight as a single (9*C_in, C_mid) matrix matching the col ordering.
    convw_mat = jnp.transpose(conv_w, (2, 3, 1, 0)).reshape(9 * C_in, C_mid)
    convw_mat = convw_mat.astype(jnp.float32)
    convb_m = conv_b.reshape(1, C_mid).astype(jnp.float32)

    # Pooling-as-matmul: block-diagonal 1/(H*W), built in the traced wrapper.
    row_img = jax.lax.broadcasted_iota(jnp.int32, (B_PAD, M_PAD), 1) // HW
    img_id = jax.lax.broadcasted_iota(jnp.int32, (B_PAD, M_PAD), 0)
    pool_mat = jnp.where(row_img == img_id, 1.0 / float(HW), 0.0).astype(jnp.float32)

    # Lane-dense classifier weights: pad NC -> 128 lanes with zeros.
    fcw_pad = jnp.zeros((C_mid, NC_PAD), jnp.float32).at[:, :NC].set(
        fc_w.T.astype(jnp.float32))
    fcb_pad = jnp.zeros((1, NC_PAD), jnp.float32).at[:, :NC].set(
        fc_b.reshape(1, NC).astype(jnp.float32))

    # ---------------- the kernel: conv(one matmul) + ReLU + GAP + FC ----------
    def kernel(col_ref, convw_ref, convb_ref, pool_ref, fcw_ref, fcb_ref, out_ref):
        # 3x3 conv as ONE (M_PAD, 9*C_in) x (9*C_in, C_mid) MXU matmul.
        feat = jnp.dot(col_ref[...], convw_ref[...],
                       preferred_element_type=jnp.float32)       # (M_PAD, C_mid)
        feat = jnp.maximum(feat + convb_ref[...], 0.0)           # bias + ReLU
        # Global average pool per image, on the MXU (block-diagonal 1/(H*W)).
        pooled = jnp.dot(pool_ref[...], feat,
                         preferred_element_type=jnp.float32)     # (B_PAD, C_mid)
        # Linear classifier into a lane-dense 128-wide slab.
        logits = jnp.dot(pooled, fcw_ref[...],
                         preferred_element_type=jnp.float32) + fcb_ref[...]
        out_ref[...] = logits                                    # (B_PAD, 128)

    vmem_spec = pl.BlockSpec(memory_space=pltpu.MemorySpace.VMEM)
    out = pl.pallas_call(
        kernel,
        out_shape=jax.ShapeDtypeStruct((B_PAD, NC_PAD), jnp.float32),
        in_specs=[vmem_spec] * 6,
        out_specs=vmem_spec,
    )(col, convw_mat, convb_m, pool_mat, fcw_pad, fcb_pad)
    return out[:B, :NC]


def reference_forward(x, conv_w, conv_b, fc_w, fc_b):
    """Pure-JAX reference of the same synthetic model (for a sanity check)."""
    y = jax.lax.conv_general_dilated(
        x, conv_w, window_strides=(1, 1), padding=((1, 1), (1, 1)),
        dimension_numbers=("NCHW", "OIHW", "NCHW"))
    y = y + conv_b.reshape(1, -1, 1, 1)
    y = jnp.maximum(y, 0.0)
    pooled = jnp.mean(y, axis=(2, 3))                            # (B, C_mid)
    return pooled @ fc_w.T + fc_b


if __name__ == "__main__":
    B, C_in, H, W = 2, 4, 16, 16
    C_mid, NC = 32, 10

    key = jax.random.PRNGKey(0)
    k1, k2, k3, k4, k5 = jax.random.split(key, 5)
    x = jax.random.normal(k1, (B, C_in, H, W), dtype=jnp.float32)
    conv_w = 0.1 * jax.random.normal(k2, (C_mid, C_in, 3, 3), dtype=jnp.float32)
    conv_b = 0.1 * jax.random.normal(k3, (C_mid,), dtype=jnp.float32)
    fc_w = 0.1 * jax.random.normal(k4, (NC, C_mid), dtype=jnp.float32)
    fc_b = 0.1 * jax.random.normal(k5, (NC,), dtype=jnp.float32)

    out = bcl_forward(x, conv_w, conv_b, fc_w, fc_b)
    out = jax.block_until_ready(out)

    ref = reference_forward(x, conv_w, conv_b, fc_w, fc_b)
    assert out.shape == (B, NC)
    assert jnp.allclose(out, ref, atol=1e-4, rtol=1e-4), "mismatch vs reference"

    print("KERNEL_OK")
</pallas_src>

<mosaic_0001>
module attributes {stable_mosaic.version = 11 : i64} {
  func.func @kernel(%arg0: memref<512x36xf32, #tpu.memory_space<vmem>>, %arg1: memref<36x32xf32, #tpu.memory_space<vmem>>, %arg2: memref<1x32xf32, #tpu.memory_space<vmem>>, %arg3: memref<8x512xf32, #tpu.memory_space<vmem>>, %arg4: memref<32x128xf32, #tpu.memory_space<vmem>>, %arg5: memref<1x128xf32, #tpu.memory_space<vmem>>, %arg6: memref<8x128xf32, #tpu.memory_space<vmem>>) attributes {dimension_semantics = [], scalar_prefetch = 0 : i64, scratch_operands = 0 : i64, tpu.core_type = #tpu.core_type<tc>} {
    %c0 = arith.constant 0 : index
    %c0_0 = arith.constant 0 : index
    %0 = vector.load %arg0[%c0, %c0_0] : memref<512x36xf32, #tpu.memory_space<vmem>>, vector<512x36xf32>
    %c0_1 = arith.constant 0 : index
    %c0_2 = arith.constant 0 : index
    %1 = vector.load %arg1[%c0_1, %c0_2] : memref<36x32xf32, #tpu.memory_space<vmem>>, vector<36x32xf32>
    %cst = arith.constant dense<0.000000e+00> : vector<512x32xf32>
    %2 = tpu.matmul %0, %1, %cst {dimension_numbers = #tpu.dot_dimension_numbers<[1], [0], [0], [1], [0, 0, 1, 1], [], []>} : vector<512x36xf32>, vector<36x32xf32>, vector<512x32xf32> -> vector<512x32xf32>
    %c0_3 = arith.constant 0 : index
    %c0_4 = arith.constant 0 : index
    %3 = vector.load %arg2[%c0_3, %c0_4] : memref<1x32xf32, #tpu.memory_space<vmem>>, vector<1x32xf32>
    %4 = vector.broadcast %3 : vector<1x32xf32> to vector<512x32xf32>
    %5 = arith.addf %2, %4 : vector<512x32xf32>
    %cst_5 = arith.constant 0.000000e+00 : f32
    %6 = vector.broadcast %cst_5 : f32 to vector<512x32xf32>
    %7 = arith.maximumf %5, %6 : vector<512x32xf32>
    %c0_6 = arith.constant 0 : index
    %c0_7 = arith.constant 0 : index
    %8 = vector.load %arg3[%c0_6, %c0_7] : memref<8x512xf32, #tpu.memory_space<vmem>>, vector<8x512xf32>
    %cst_8 = arith.constant dense<0.000000e+00> : vector<8x32xf32>
    %9 = tpu.matmul %8, %7, %cst_8 {dimension_numbers = #tpu.dot_dimension_numbers<[1], [0], [0], [1], [0, 0, 1, 1], [], []>} : vector<8x512xf32>, vector<512x32xf32>, vector<8x32xf32> -> vector<8x32xf32>
    %c0_9 = arith.constant 0 : index
    %c0_10 = arith.constant 0 : index
    %10 = vector.load %arg4[%c0_9, %c0_10] : memref<32x128xf32, #tpu.memory_space<vmem>>, vector<32x128xf32>
    %cst_11 = arith.constant dense<0.000000e+00> : vector<8x128xf32>
    %11 = tpu.matmul %9, %10, %cst_11 {dimension_numbers = #tpu.dot_dimension_numbers<[1], [0], [0], [1], [0, 0, 1, 1], [], []>} : vector<8x32xf32>, vector<32x128xf32>, vector<8x128xf32> -> vector<8x128xf32>
    %c0_12 = arith.constant 0 : index
    %c0_13 = arith.constant 0 : index
    %12 = vector.load %arg5[%c0_12, %c0_13] : memref<1x128xf32, #tpu.memory_space<vmem>>, vector<1x128xf32>
    %13 = vector.broadcast %12 : vector<1x128xf32> to vector<8x128xf32>
    %14 = arith.addf %11, %13 : vector<8x128xf32>
    %c0_14 = arith.constant 0 : index
    %c0_15 = arith.constant 0 : index
    %15 = vector.load %arg6[%c0_14, %c0_15] : memref<8x128xf32, #tpu.memory_space<vmem>>, vector<8x128xf32>
    tpu.vector_store %arg6[%c0_14, %c0_15], %14 {strides = array<i32>} : memref<8x128xf32, #tpu.memory_space<vmem>>, vector<8x128xf32>,
    return
  }
}

</mosaic_0001>

<bundles_post_ra>
// kernel: tpu_custom_call.1
= control target key start
LH: loop header
LB: loop body
LE: loop exit
PB: predicated region body
PF: predicated region fallthrough
CT: control target
= control target key end

     0   :  { %vm100_vm0 = vcmask 293888   ;;  %vm293_vm1 = vcmask 1043456   ;;  %s1903_s0 = inlined_call_operand.vmem [shape: f32[512,36], index: 0, kind: input, shape index: {}]   ;;  %s1904_s1 = inlined_call_operand.vmem [shape: f32[36,32], index: 1, kind: input, shape index: {}]   ;;  %s1905_s2 = inlined_call_operand.vmem [shape: f32[1,32], index: 2, kind: input, shape index: {}]   ;;  %s1906_s3 = inlined_call_operand.vmem [shape: f32[8,512], index: 3, kind: input, shape index: {}]   ;;  %s1907_s4 = inlined_call_operand.vmem [shape: f32[32,128], index: 4, kind: input, shape index: {}]   ;;  %s1908_s5 = inlined_call_operand.vmem [shape: f32[1,128], index: 5, kind: input, shape index: {}]   ;;  %s1909_s6 = inlined_call_operand.hbm [shape: f32[8,128], index: 6, kind: output, shape index: {}]  }
   0x1   :  { %v88_v0 = vld [vmem:[%s1904_s1] sm:$0xff]  ;;  %v89_v1 = vld [vmem:[%s1904_s1 + $0x8] sm:$0xff]  ;;  %v90_v2 = vld [vmem:[%s1904_s1 + $0x10] sm:$0xff] }
   0x2   :  { %v1319_v3 = vpack.c.bf16 %v89_v1, %v88_v0  ;;  %v91_v4 = vld [vmem:[%s1904_s1 + $0x18] sm:$0xff]  ;;  %v24_v5 = vld [vmem:[%s1903_s0] sm:$0xff]  ;;  %v25_v8 = vld [vmem:[%s1903_s0 + $0x8] sm:$0xff] }
   0x3   :  { %v1323_v6 = vpack.c.bf16 %v91_v4, %v90_v2  ;;  %1212 = vmatprep.mubr.msk.f32.mxu0 %vm100_vm0, %v24_v5  ;;  %v92_v7 = vld [vmem:[%s1904_s1 + $0x20] sm:$0xf]  ;;  %v26_v9 = vld [vmem:[%s1903_s0 + $0x10] sm:$0xff]  ;;  %v69_v11 = vld [vmem:[%s1903_s0 + $0x168] sm:$0xff] }
   0x4   :  { %1320 = vmatprep.subr.bf16.mxu0 %v1319_v3  ;;  %1397 = vmatprep.subr.bf16.mxu1 %v1319_v3  ;;  %v68_v10 = vld [vmem:[%s1903_s0 + $0x160] sm:$0xff]  ;;  %v70_v12 = vld [vmem:[%s1903_s0 + $0x170] sm:$0xff]  ;;  %v27_v13 = vld [vmem:[%s1903_s0 + $0x18] sm:$0xff] }
   0x5   :  { %1322 = vmatpush3.bf16.msra.mxu0 %v1319_v3  ;;  %1400 = vmatpush3.bf16.msra.mxu1 %v1319_v3  ;;  %v28_v14 = vld [vmem:[%s1903_s0 + $0x20] sm:$0xff]  ;;  %v71_v15 = vld [vmem:[%s1903_s0 + $0x178] sm:$0xff]  ;;  %v29_v17 = vld [vmem:[%s1903_s0 + $0x28] sm:$0xff] }
   0x6   :  { %1324 = vmatprep.subr.bf16.mxu0 %v1323_v6  ;;  %1398 = vmatprep.subr.bf16.mxu1 %v1323_v6  ;;  %v72_v16 = vld [vmem:[%s1903_s0 + $0x180] sm:$0xff]  ;;  %v30_v18 = vld [vmem:[%s1903_s0 + $0x30] sm:$0xff]  ;;  %v73_v19 = vld [vmem:[%s1903_s0 + $0x188] sm:$0xff] }
   0x7   :  { %1278 = vmatprep.mubr.msk.f32.mxu1 %vm100_vm0, %v68_v10  ;;  %v74_v20 = vld [vmem:[%s1903_s0 + $0x190] sm:$0xff]  ;;  %v31_v21 = vld [vmem:[%s1903_s0 + $0x38] sm:$0xff]  ;;  %v32_v22 = vld [vmem:[%s1903_s0 + $0x40] sm:$0xff] }
   0x8   :  { %v75_v23 = vld [vmem:[%s1903_s0 + $0x198] sm:$0xff] }
   0x9   :  { %1326 = vmatpush3.bf16.msra.mxu0 %v1323_v6  ;;  %1401 = vmatpush3.bf16.msra.mxu1 %v1323_v6 }
   0xa   :  { %1210 = vmatprep.subr.msk.mxu0 %vm293_vm1, %v92_v7  ;;  %1399 = vmatprep.subr.msk.mxu1 %vm293_vm1, %v92_v7 }
   0xd   :  { %1211 = vmatpush3.msk.msra.mxu0 %vm293_vm1, %v92_v7  ;;  %1402 = vmatpush3.msk.msra.mxu1 %vm293_vm1, %v92_v7 }
   0xe   :  { %1213 = vmatmul.mubr.msk.f32.vlgmr.msra.gmra.mrb[0].mxu0 %vm100_vm0, %v25_v8  ;;  %1279 = vmatmul.mubr.msk.f32.vlgmr.msra.gmra.mrb[0].mxu1 %vm100_vm0, %v69_v11 }
   0xf   :  { %1215 = vmatprep.mubr.msk.f32.mxu0 %vm100_vm0, %v26_v9  ;;  %1281 = vmatprep.mubr.msk.f32.mxu1 %vm100_vm0, %v70_v12 }
  0x12   :  { %1216 = vmatmul.mubr.msk.f32.gmra.mrb[2].mxu0 %vm100_vm0, %v27_v13  ;;  %1282 = vmatmul.mubr.msk.f32.gmra.mrb[2].mxu1 %vm100_vm0, %v71_v15 }
  0x13   :  { %1218 = vmatprep.mubr.msk.f32.mxu0 %vm100_vm0, %v28_v14  ;;  %1284 = vmatprep.mubr.msk.f32.mxu1 %vm100_vm0, %v72_v16 }
  0x16   :  { %1219 = vmatmul.mubr.msk.f32.gmra.mrb[4].mxu0 %vm100_vm0, %v29_v17  ;;  %1285 = vmatmul.mubr.msk.f32.gmra.mrb[4].mxu1 %vm100_vm0, %v73_v19 }
  0x17   :  { %1221 = vmatprep.mubr.msk.f32.mxu0 %vm100_vm0, %v30_v18  ;;  %1287 = vmatprep.mubr.msk.f32.mxu1 %vm100_vm0, %v74_v20 }
  0x18   :  { %11 = vsyncpa [#allocation3], 0  ;;  %v76_v24 = vld [vmem:[%s1903_s0 + $0x1a0] sm:$0xff]  ;;  %v33_v25 = vld [vmem:[%s1903_s0 + $0x48] sm:$0xff]  ;;  %vm1432_vm2 = vmmov 0   ;;  %vm901_vm3 = vcmask 261120  }
  0x19   :  { %v34_v26 = vld [vmem:[%s1903_s0 + $0x50] sm:$0xff]  ;;  %v77_v27 = vld [vmem:[%s1903_s0 + $0x1a8] sm:$0xff]  ;;  %v35_v29 = vld [vmem:[%s1903_s0 + $0x58] sm:$0xff]  ;;  %s1434_s26 = smov [#allocation2]  }
  0x1a   :  { %1222 = vmatmul.mubr.msk.f32.gmra.mrb[6].mxu0 %vm100_vm0, %v31_v21  ;;  %1288 = vmatmul.mubr.msk.f32.gmra.mrb[6].mxu1 %vm100_vm0, %v75_v23  ;;  %v78_v28 = vld [vmem:[%s1903_s0 + $0x1b0] sm:$0xff]  ;;  %v36_v30 = vld [vmem:[%s1903_s0 + $0x60] sm:$0xff]  ;;  %v79_v31 = vld [vmem:[%s1903_s0 + $0x1b8] sm:$0xff] }
  0x1b   :  { %1224 = vmatprep.mubr.msk.f32.mxu0 %vm100_vm0, %v32_v22  ;;  %1290 = vmatprep.mubr.msk.f32.mxu1 %vm100_vm0, %v76_v24  ;;  %v80_v32 = vld [vmem:[%s1903_s0 + $0x1c0] sm:$0xff]  ;;  %v37_v33 = vld [vmem:[%s1903_s0 + $0x68] sm:$0xff]  ;;  %v38_v34 = vld [vmem:[%s1903_s0 + $0x70] sm:$0xff] }
  0x1c   :  { %v81_v35 = vld [vmem:[%s1903_s0 + $0x1c8] sm:$0xff]  ;;  %v82_v36 = vld [vmem:[%s1903_s0 + $0x1d0] sm:$0xff]  ;;  %v39_v37 = vld [vmem:[%s1903_s0 + $0x78] sm:$0xff] }
  0x1d   :  { %v40_v38 = vld [vmem:[%s1903_s0 + $0x80] sm:$0xff]  ;;  %v83_v39 = vld [vmem:[%s1903_s0 + $0x1d8] sm:$0xff]  ;;  %v41_v41 = vld [vmem:[%s1903_s0 + $0x88] sm:$0xff] }
  0x1e   :  { %1225 = vmatmul.mubr.msk.f32.gmra.mrb[8].mxu0 %vm100_vm0, %v33_v25  ;;  %1291 = vmatmul.mubr.msk.f32.gmra.mrb[8].mxu1 %vm100_vm0, %v77_v27  ;;  %v84_v40 = vld [vmem:[%s1903_s0 + $0x1e0] sm:$0xff]  ;;  %v42_v42 = vld [vmem:[%s1903_s0 + $0x90] sm:$0xff]  ;;  %v85_v43 = vld [vmem:[%s1903_s0 + $0x1e8] sm:$0xff] }
  0x1f   :  { %1227 = vmatprep.mubr.msk.f32.mxu0 %vm100_vm0, %v34_v26  ;;  %1293 = vmatprep.mubr.msk.f32.mxu1 %vm100_vm0, %v78_v28  ;;  %v86_v44 = vld [vmem:[%s1903_s0 + $0x1f0] sm:$0xff]  ;;  %v43_v45 = vld [vmem:[%s1903_s0 + $0x98] sm:$0xff]  ;;  %v44_v46 = vld [vmem:[%s1903_s0 + $0xa0] sm:$0xff] }
  0x20   :  { %v87_v47 = vld [vmem:[%s1903_s0 + $0x1f8] sm:$0xff]  ;;  %v45_v48 = vld [vmem:[%s1903_s0 + $0xa8] sm:$0xff]  ;;  %v46_v49 = vld [vmem:[%s1903_s0 + $0xb0] sm:$0xff] }
  0x21   :  { %v47_v50 = vld [vmem:[%s1903_s0 + $0xb8] sm:$0xff]  ;;  %v48_v51 = vld [vmem:[%s1903_s0 + $0xc0] sm:$0xff]  ;;  %v49_v52 = vld [vmem:[%s1903_s0 + $0xc8] sm:$0xff] }
  0x22   :  { %1228 = vmatmul.mubr.msk.f32.gmra.mrb[10].mxu0 %vm100_vm0, %v35_v29  ;;  %1294 = vmatmul.mubr.msk.f32.gmra.mrb[10].mxu1 %vm100_vm0, %v79_v31  ;;  %v50_v53 = vld [vmem:[%s1903_s0 + $0xd0] sm:$0xff]  ;;  %v51_v54 = vld [vmem:[%s1903_s0 + $0xd8] sm:$0xff]  ;;  %v52_v55 = vld [vmem:[%s1903_s0 + $0xe0] sm:$0xff] }
  0x23   :  { %1230 = vmatprep.mubr.msk.f32.mxu0 %vm100_vm0, %v36_v30  ;;  %1296 = vmatprep.mubr.msk.f32.mxu1 %vm100_vm0, %v80_v32  ;;  %v53_v56 = vld [vmem:[%s1903_s0 + $0xe8] sm:$0xff]  ;;  %v54_v57 = vld [vmem:[%s1903_s0 + $0xf0] sm:$0xff]  ;;  %v55_v58 = vld [vmem:[%s1903_s0 + $0xf8] sm:$0xff] }
  0x24   :  { %v56_v59 = vld [vmem:[%s1903_s0 + $0x100] sm:$0xff]  ;;  %v57_v60 = vld [vmem:[%s1903_s0 + $0x108] sm:$0xff]  ;;  %v58_v61 = vld [vmem:[%s1903_s0 + $0x110] sm:$0xff] }
  0x25   :  { %v59_v62 = vld [vmem:[%s1903_s0 + $0x118] sm:$0xff]  ;;  %v60_v63 = vld [vmem:[%s1903_s0 + $0x120] sm:$0xff]  ;;  %v61_v0 = vld [vmem:[%s1903_s0 + $0x128] sm:$0xff] }
  0x26   :  { %1231 = vmatmul.mubr.msk.f32.gmra.mrb[12].mxu0 %vm100_vm0, %v37_v33  ;;  %1297 = vmatmul.mubr.msk.f32.gmra.mrb[12].mxu1 %vm100_vm0, %v81_v35  ;;  %v62_v1 = vld [vmem:[%s1903_s0 + $0x130] sm:$0xff]  ;;  %v63_v2 = vld [vmem:[%s1903_s0 + $0x138] sm:$0xff]  ;;  %v64_v3 = vld [vmem:[%s1903_s0 + $0x140] sm:$0xff] }
  0x27   :  { %1233 = vmatprep.mubr.msk.f32.mxu0 %vm100_vm0, %v38_v34  ;;  %1299 = vmatprep.mubr.msk.f32.mxu1 %vm100_vm0, %v82_v36  ;;  %v65_v4 = vld [vmem:[%s1903_s0 + $0x148] sm:$0xff]  ;;  %v66_v5 = vld [vmem:[%s1903_s0 + $0x150] sm:$0xff]  ;;  %v67_v6 = vld [vmem:[%s1903_s0 + $0x158] sm:$0xff] }
  0x28   :  { %v747_v7 = vld [vmem:[%s1906_s3 + $0x8] sm:$0xff]  ;;  %v1747_v8 = vld [vmem:[%s1905_s2] ss:$0 sm:$0xff] }
  0x2a   :  { %1234 = vmatmul.mubr.msk.f32.gmra.mrb[14].mxu0 %vm100_vm0, %v39_v37  ;;  %1300 = vmatmul.mubr.msk.f32.gmra.mrb[14].mxu1 %vm100_vm0, %v83_v39 }
  0x2b   :  { %1236 = vmatprep.mubr.msk.f32.mxu0 %vm100_vm0, %v40_v38  ;;  %1302 = vmatprep.mubr.msk.f32.mxu1 %vm100_vm0, %v84_v40 }
  0x2e   :  { %1237 = vmatmul.mubr.msk.f32.gmra.mrb[16].mxu0 %vm100_vm0, %v41_v41  ;;  %1303 = vmatmul.mubr.msk.f32.gmra.mrb[16].mxu1 %vm100_vm0, %v85_v43 }
  0x2f   :  { %1239 = vmatprep.mubr.msk.f32.mxu0 %vm100_vm0, %v42_v42  ;;  %1305 = vmatprep.mubr.msk.f32.mxu1 %vm100_vm0, %v86_v44 }
  0x32   :  { %1240 = vmatmul.mubr.msk.f32.gmra.mrb[18].mxu0 %vm100_vm0, %v43_v45  ;;  %1306 = vmatmul.mubr.msk.f32.gmra.mrb[18].mxu1 %vm100_vm0, %v87_v47 }
  0x33   :  { %1242 = vmatprep.mubr.msk.f32.mxu0 %vm100_vm0, %v44_v46  ;;  %814 = vmatprep.mubr.f32.mxu1 %v747_v7 }
  0x36   :  { %1243 = vmatmul.mubr.msk.f32.gmra.mrb[20].mxu0 %vm100_vm0, %v45_v48 }
  0x37   :  { %1245 = vmatprep.mubr.msk.f32.mxu0 %vm100_vm0, %v46_v49 }
  0x3a   :  { %1246 = vmatmul.mubr.msk.f32.gmra.mrb[22].mxu0 %vm100_vm0, %v47_v50 }
  0x3b   :  { %1248 = vmatprep.mubr.msk.f32.mxu0 %vm100_vm0, %v48_v51 }
  0x3e   :  { %1249 = vmatmul.mubr.msk.f32.gmra.mrb[24].mxu0 %vm100_vm0, %v49_v52 }
  0x3f   :  { %1251 = vmatprep.mubr.msk.f32.mxu0 %vm100_vm0, %v50_v53 }
  0x42   :  { %1252 = vmatmul.mubr.msk.f32.gmra.mrb[26].mxu0 %vm100_vm0, %v51_v54 }
  0x43   :  { %1254 = vmatprep.mubr.msk.f32.mxu0 %vm100_vm0, %v52_v55 }
  0x46   :  { %1255 = vmatmul.mubr.msk.f32.gmra.mrb[28].mxu0 %vm100_vm0, %v53_v56 }
  0x47   :  { %1257 = vmatprep.mubr.msk.f32.mxu0 %vm100_vm0, %v54_v57 }
  0x4a   :  { %1258 = vmatmul.mubr.msk.f32.gmra.mrb[30].mxu0 %vm100_vm0, %v55_v58 }
  0x4b   :  { %1260 = vmatprep.mubr.msk.f32.mxu0 %vm100_vm0, %v56_v59 }
  0x4e   :  { %1261 = vmatmul.mubr.msk.f32.gmra.mrb[32].mxu0 %vm100_vm0, %v57_v60 }
  0x4f   :  { %1263 = vmatprep.mubr.msk.f32.mxu0 %vm100_vm0, %v58_v61 }
  0x52   :  { %1264 = vmatmul.mubr.msk.f32.gmra.mrb[34].mxu0 %vm100_vm0, %v59_v62 }
  0x53   :  { %1266 = vmatprep.mubr.msk.f32.mxu0 %vm100_vm0, %v60_v63 }
  0x56   :  { %1267 = vmatmul.mubr.msk.f32.gmra.mrb[36].mxu0 %vm100_vm0, %v61_v0 }
  0x57   :  { %1269 = vmatprep.mubr.msk.f32.mxu0 %vm100_vm0, %v62_v1 }
  0x5a   :  { %1270 = vmatmul.mubr.msk.f32.gmra.mrb[38].mxu0 %vm100_vm0, %v63_v2 }
  0x5b   :  { %1272 = vmatprep.mubr.msk.f32.mxu0 %vm100_vm0, %v64_v3 }
  0x5e   :  { %1273 = vmatmul.mubr.msk.f32.gmra.mrb[40].mxu0 %vm100_vm0, %v65_v4 }
  0x5f   :  { %1275 = vmatprep.mubr.msk.f32.mxu0 %vm100_vm0, %v66_v5 }
  0x62   :  { %1276 = vmatmul.mubr.msk.f32.gmra.mrb[42].mxu0 %vm100_vm0, %v67_v6 }
  0xe1   :  { %v1214_v9 = vpop.f32.mrb[0].mxu0  ;;  %v1280_v12 = vpop.f32.mrb[0].mxu1 }
  0xe2   :  { %v369_v10 = vadd.f32 %v1214_v9, %v1747_v8  ;;  %v363_v11 = vpop.f32.mrb[1].mxu0  ;;  %v589_v14 = vadd.f32 %v1280_v12, %v1747_v8  ;;  %v583_v15 = vpop.f32.mrb[1].mxu1 }
  0xe3   :  { %v364_v13 = vadd.f32 %v1747_v8, %v363_v11  ;;  %v584_v17 = vadd.f32 %v1747_v8, %v583_v15 }
  0xe4   :  { %v683_v16 = vmax.f32 %v369_v10, 0.0  ;;  %v727_v20 = vmax.f32 %v589_v14, 0.0 }
  0xe5   :  { %v682_v18 = vmax.f32 %v364_v13, 0.0  ;;  %v1217_v19 = vpop.f32.mrb[2].mxu0  ;;  %v726_v23 = vmax.f32 %v584_v17, 0.0  ;;  %v1283_v24 = vpop.f32.mrb[2].mxu1 }
  0xe6   :  { %v379_v21 = vadd.f32 %v1217_v19, %v1747_v8  ;;  %v373_v22 = vpop.f32.mrb[3].mxu0  ;;  %v599_v27 = vadd.f32 %v1283_v24, %v1747_v8  ;;  %v593_v28 = vpop.f32.mrb[3].mxu1 }
  0xe7   :  { %v1754_v25 = vpack.c.bf16 %v683_v16, %v682_v18  ;;  %v374_v26 = vadd.f32 %v1747_v8, %v373_v22  ;;  %v1758_v30 = vpack.c.bf16 %v727_v20, %v726_v23  ;;  %v594_v31 = vadd.f32 %v1747_v8, %v593_v28 }
  0xe8   :  { %v685_v29 = vmax.f32 %v379_v21, 0.0  ;;  %v729_v34 = vmax.f32 %v599_v27, 0.0 }
  0xe9   :  { %v684_v32 = vmax.f32 %v374_v26, 0.0  ;;  %v1220_v33 = vpop.f32.mrb[4].mxu0  ;;  %v728_v37 = vmax.f32 %v594_v31, 0.0  ;;  %v1286_v38 = vpop.f32.mrb[4].mxu1 }
  0xea   :  { %v389_v35 = vadd.f32 %v1220_v33, %v1747_v8  ;;  %v383_v36 = vpop.f32.mrb[5].mxu0  ;;  %v609_v41 = vadd.f32 %v1286_v38, %v1747_v8  ;;  %v603_v42 = vpop.f32.mrb[5].mxu1 }
  0xeb   :  { %v1762_v39 = vpack.c.bf16 %v685_v29, %v684_v32  ;;  %v384_v40 = vadd.f32 %v1747_v8, %v383_v36  ;;  %v1766_v44 = vpack.c.bf16 %v729_v34, %v728_v37  ;;  %v604_v45 = vadd.f32 %v1747_v8, %v603_v42 }
  0xec   :  { %v687_v43 = vmax.f32 %v389_v35, 0.0  ;;  %v731_v48 = vmax.f32 %v609_v41, 0.0 }
  0xed   :  { %v686_v46 = vmax.f32 %v384_v40, 0.0  ;;  %v1223_v47 = vpop.f32.mrb[6].mxu0  ;;  %v730_v51 = vmax.f32 %v604_v45, 0.0  ;;  %v1289_v52 = vpop.f32.mrb[6].mxu1 }
  0xee   :  { %v399_v49 = vadd.f32 %v1223_v47, %v1747_v8  ;;  %v393_v50 = vpop.f32.mrb[7].mxu0  ;;  %v619_v55 = vadd.f32 %v1289_v52, %v1747_v8  ;;  %v613_v56 = vpop.f32.mrb[7].mxu1 }
  0xef   :  { %v1770_v53 = vpack.c.bf16 %v687_v43, %v686_v46  ;;  %v394_v54 = vadd.f32 %v1747_v8, %v393_v50  ;;  %v1774_v58 = vpack.c.bf16 %v731_v48, %v730_v51  ;;  %v614_v59 = vadd.f32 %v1747_v8, %v613_v56 }
  0xf0   :  { %v689_v57 = vmax.f32 %v399_v49, 0.0  ;;  %v733_v62 = vmax.f32 %v619_v55, 0.0 }
  0xf1   :  { %v688_v60 = vmax.f32 %v394_v54, 0.0  ;;  %v1226_v61 = vpop.f32.mrb[8].mxu0  ;;  %v732_v1 = vmax.f32 %v614_v59, 0.0  ;;  %v1292_v2 = vpop.f32.mrb[8].mxu1 }
  0xf2   :  { %v409_v63 = vadd.f32 %v1226_v61, %v1747_v8  ;;  %v403_v0 = vpop.f32.mrb[9].mxu0  ;;  %v629_v5 = vadd.f32 %v1292_v2, %v1747_v8  ;;  %v623_v6 = vpop.f32.mrb[9].mxu1 }
  0xf3   :  { %v1778_v3 = vpack.c.bf16 %v689_v57, %v688_v60  ;;  %v404_v4 = vadd.f32 %v1747_v8, %v403_v0  ;;  %v1782_v9 = vpack.c.bf16 %v733_v62, %v732_v1  ;;  %v624_v10 = vadd.f32 %v1747_v8, %v623_v6 }
  0xf4   :  { %v691_v7 = vmax.f32 %v409_v63, 0.0  ;;  %v735_v13 = vmax.f32 %v629_v5, 0.0 }
  0xf5   :  { %v690_v11 = vmax.f32 %v404_v4, 0.0  ;;  %v1229_v12 = vpop.f32.mrb[10].mxu0  ;;  %v734_v16 = vmax.f32 %v624_v10, 0.0  ;;  %v1295_v17 = vpop.f32.mrb[10].mxu1 }
  0xf6   :  { %v419_v14 = vadd.f32 %v1229_v12, %v1747_v8  ;;  %v413_v15 = vpop.f32.mrb[11].mxu0  ;;  %v639_v20 = vadd.f32 %v1295_v17, %v1747_v8  ;;  %v633_v21 = vpop.f32.mrb[11].mxu1 }
  0xf7   :  { %v1786_v18 = vpack.c.bf16 %v691_v7, %v690_v11  ;;  %v414_v19 = vadd.f32 %v1747_v8, %v413_v15  ;;  %v1790_v23 = vpack.c.bf16 %v735_v13, %v734_v16  ;;  %v634_v24 = vadd.f32 %v1747_v8, %v633_v21 }
  0xf8   :  { %v693_v22 = vmax.f32 %v419_v14, 0.0  ;;  %v737_v28 = vmax.f32 %v639_v20, 0.0 }
  0xf9   :  { %v692_v26 = vmax.f32 %v414_v19, 0.0  ;;  %v1232_v27 = vpop.f32.mrb[12].mxu0  ;;  %v736_v32 = vmax.f32 %v634_v24, 0.0  ;;  %v1298_v33 = vpop.f32.mrb[12].mxu1 }
  0xfa   :  { %v429_v29 = vadd.f32 %v1232_v27, %v1747_v8  ;;  %v423_v31 = vpop.f32.mrb[13].mxu0  ;;  %v649_v36 = vadd.f32 %v1298_v33, %v1747_v8  ;;  %v643_v37 = vpop.f32.mrb[13].mxu1 }
  0xfb   :  { %v1794_v34 = vpack.c.bf16 %v693_v22, %v692_v26  ;;  %v424_v35 = vadd.f32 %v1747_v8, %v423_v31  ;;  %v1798_v40 = vpack.c.bf16 %v737_v28, %v736_v32  ;;  %v644_v41 = vadd.f32 %v1747_v8, %v643_v37 }
  0xfc   :  { %v695_v38 = vmax.f32 %v429_v29, 0.0  ;;  %v739_v45 = vmax.f32 %v649_v36, 0.0 }
  0xfd   :  { %v694_v42 = vmax.f32 %v424_v35, 0.0  ;;  %v1235_v43 = vpop.f32.mrb[14].mxu0  ;;  %v738_v48 = vmax.f32 %v644_v41, 0.0  ;;  %v1301_v49 = vpop.f32.mrb[14].mxu1 }
  0xfe   :  { %v439_v46 = vadd.f32 %v1235_v43, %v1747_v8  ;;  %v433_v47 = vpop.f32.mrb[15].mxu0  ;;  %v659_v52 = vadd.f32 %v1301_v49, %v1747_v8  ;;  %v653_v54 = vpop.f32.mrb[15].mxu1 }
  0xff   :  { %v1802_v50 = vpack.c.bf16 %v695_v38, %v694_v42  ;;  %v434_v51 = vadd.f32 %v1747_v8, %v433_v47  ;;  %v1806_v56 = vpack.c.bf16 %v739_v45, %v738_v48  ;;  %v654_v57 = vadd.f32 %v1747_v8, %v653_v54 }
 0x100   :  { %v697_v55 = vmax.f32 %v439_v46, 0.0  ;;  %v741_v61 = vmax.f32 %v659_v52, 0.0 }
 0x101   :  { %v696_v59 = vmax.f32 %v434_v51, 0.0  ;;  %v1238_v60 = vpop.f32.mrb[16].mxu0  ;;  %v740_v0 = vmax.f32 %v654_v57, 0.0  ;;  %v1304_v1 = vpop.f32.mrb[16].mxu1 }
 0x102   :  { %v449_v62 = vadd.f32 %v1238_v60, %v1747_v8  ;;  %v443_v63 = vpop.f32.mrb[17].mxu0  ;;  %v669_v5 = vadd.f32 %v1304_v1, %v1747_v8  ;;  %v663_v6 = vpop.f32.mrb[17].mxu1 }
 0x103   :  { %v1810_v2 = vpack.c.bf16 %v697_v55, %v696_v59  ;;  %v444_v4 = vadd.f32 %v1747_v8, %v443_v63  ;;  %v1814_v10 = vpack.c.bf16 %v741_v61, %v740_v0  ;;  %v664_v11 = vadd.f32 %v1747_v8, %v663_v6 }
 0x104   :  { %v699_v7 = vmax.f32 %v449_v62, 0.0  ;;  %v743_v14 = vmax.f32 %v669_v5, 0.0 }
 0x105   :  { %v698_v12 = vmax.f32 %v444_v4, 0.0  ;;  %v1241_v13 = vpop.f32.mrb[18].mxu0  ;;  %v742_v17 = vmax.f32 %v664_v11, 0.0  ;;  %v1307_v19 = vpop.f32.mrb[18].mxu1 }
 0x106   :  { %v459_v15 = vadd.f32 %v1241_v13, %v1747_v8  ;;  %v453_v16 = vpop.f32.mrb[19].mxu0  ;;  %v679_v22 = vadd.f32 %v1307_v19, %v1747_v8  ;;  %v673_v24 = vpop.f32.mrb[19].mxu1 }
 0x107   :  { %v1327_v20 = vpack.c.bf16 %v699_v7, %v698_v12  ;;  %v454_v21 = vadd.f32 %v1747_v8, %v453_v16  ;;  %v1820_v27 = vpack.c.bf16 %v743_v14, %v742_v17  ;;  %v674_v28 = vadd.f32 %v1747_v8, %v673_v24 }
 0x108   :  { %v701_v26 = vmax.f32 %v459_v15, 0.0  ;;  %v745_v32 = vmax.f32 %v679_v22, 0.0 }
 0x109   :  { %v700_v29 = vmax.f32 %v454_v21, 0.0  ;;  %v1244_v31 = vpop.f32.mrb[20].mxu0  ;;  %1328 = vmatprep.subr.bf16.mxu1 %v1327_v20  ;;  %v744_v36 = vmax.f32 %v674_v28, 0.0 }
 0x10a   :  { %v469_v33 = vadd.f32 %v1244_v31, %v1747_v8  ;;  %v463_v35 = vpop.f32.mrb[21].mxu0  ;;  %1330 = vmatpush3.bf16.msra.mxu1 %v1754_v25 }
 0x10b   :  { %v1331_v37 = vpack.c.bf16 %v701_v26, %v700_v29  ;;  %v464_v38 = vadd.f32 %v1747_v8, %v463_v35  ;;  %v1826_v42 = vpack.c.bf16 %v745_v32, %v744_v36  ;;  %v746_v35 = vld [vmem:[%s1906_s3] sm:$0xff] }
 0x10c   :  { %v703_v41 = vmax.f32 %v469_v33, 0.0 }
 0x10d   :  { %v702_v43 = vmax.f32 %v464_v38, 0.0  ;;  %v1247_v45 = vpop.f32.mrb[22].mxu0  ;;  %1332 = vmatprep.subr.bf16.mxu1 %v1331_v37  ;;  %v749_v37 = vld [vmem:[%s1906_s3 + $0x18] sm:$0xff] }
 0x10e   :  { %v479_v46 = vadd.f32 %v1247_v45, %v1747_v8  ;;  %v473_v47 = vpop.f32.mrb[23].mxu0  ;;  %1334 = vmatpush3.bf16.msra.mxu1 %v1762_v39 }
 0x10f   :  { %v1335_v48 = vpack.c.bf16 %v703_v41, %v702_v43  ;;  %v474_v49 = vadd.f32 %v1747_v8, %v473_v47 }
 0x110   :  { %v705_v51 = vmax.f32 %v479_v46, 0.0 }
 0x111   :  { %v704_v25 = vmax.f32 %v474_v49, 0.0  ;;  %v1250_v52 = vpop.f32.mrb[24].mxu0  ;;  %1336 = vmatprep.subr.bf16.mxu1 %v1335_v48 }
 0x112   :  { %v489_v54 = vadd.f32 %v1250_v52, %v1747_v8  ;;  %v483_v55 = vpop.f32.mrb[25].mxu0  ;;  %1338 = vmatpush3.bf16.msra.mxu1 %v1770_v53 }
 0x113   :  { %v1339_v57 = vpack.c.bf16 %v705_v51, %v704_v25  ;;  %v484_v59 = vadd.f32 %v1747_v8, %v483_v55 }
 0x114   :  { %v707_v60 = vmax.f32 %v489_v54, 0.0 }
 0x115   :  { %v706_v61 = vmax.f32 %v484_v59, 0.0  ;;  %v1253_v62 = vpop.f32.mrb[26].mxu0  ;;  %1340 = vmatprep.subr.bf16.mxu1 %v1339_v57 }
 0x116   :  { %v499_v39 = vadd.f32 %v1253_v62, %v1747_v8  ;;  %v493_v63 = vpop.f32.mrb[27].mxu0  ;;  %1342 = vmatpush3.bf16.msra.mxu1 %v1778_v3 }
 0x117   :  { %v1343_v0 = vpack.c.bf16 %v707_v60, %v706_v61  ;;  %v494_v1 = vadd.f32 %v1747_v8, %v493_v63 }
 0x118   :  { %v709_v4 = vmax.f32 %v499_v39, 0.0 }
 0x119   :  { %v708_v5 = vmax.f32 %v494_v1, 0.0  ;;  %v1256_v6 = vpop.f32.mrb[28].mxu0  ;;  %1344 = vmatprep.subr.bf16.mxu1 %v1343_v0 }
 0x11a   :  { %v509_v53 = vadd.f32 %v1256_v6, %v1747_v8  ;;  %v503_v7 = vpop.f32.mrb[29].mxu0  ;;  %1346 = vmatpush3.bf16.msra.mxu1 %v1786_v18 }
 0x11b   :  { %v1347_v11 = vpack.c.bf16 %v709_v4, %v708_v5  ;;  %v504_v12 = vadd.f32 %v1747_v8, %v503_v7 }
 0x11c   :  { %v711_v13 = vmax.f32 %v509_v53, 0.0 }
 0x11d   :  { %v710_v14 = vmax.f32 %v504_v12, 0.0  ;;  %v1259_v15 = vpop.f32.mrb[30].mxu0  ;;  %1348 = vmatprep.subr.bf16.mxu1 %v1347_v11  ;;  %v1433_v11 = vmov 0.0  }
 0x11e   :  { %v519_v3 = vadd.f32 %v1259_v15, %v1747_v8  ;;  %v513_v16 = vpop.f32.mrb[31].mxu0  ;;  %1350 = vmatpush3.bf16.msra.mxu1 %v1794_v34 }
 0x11f   :  { %v1351_v17 = vpack.c.bf16 %v711_v13, %v710_v14  ;;  %v514_v19 = vadd.f32 %v1747_v8, %v513_v16 }
 0x120   :  { %v713_v20 = vmax.f32 %v519_v3, 0.0 }
 0x121   :  { %v712_v21 = vmax.f32 %v514_v19, 0.0  ;;  %1352 = vmatprep.subr.bf16.mxu1 %v1351_v17  ;;  %v1262_v22 = vpop.f32.mrb[32].mxu0  ;;  %v1056_v19 = vld [vmem:[%s1908_s5] ss:$0 sm:$0xff] }
 0x122   :  { %v529_v18 = vadd.f32 %v1262_v22, %v1747_v8  ;;  %1354 = vmatpush3.bf16.msra.mxu1 %v1802_v50  ;;  %v523_v24 = vpop.f32.mrb[33].mxu0 }
 0x123   :  { %v1355_v26 = vpack.c.bf16 %v713_v20, %v712_v21  ;;  %v524_v28 = vadd.f32 %v1747_v8, %v523_v24 }
 0x124   :  { %v715_v29 = vmax.f32 %v529_v18, 0.0 }
 0x125   :  { %v714_v31 = vmax.f32 %v524_v28, 0.0  ;;  %1356 = vmatprep.subr.bf16.mxu1 %v1355_v26  ;;  %v1265_v32 = vpop.f32.mrb[34].mxu0 }
 0x126   :  { %v539_v34 = vadd.f32 %v1265_v32, %v1747_v8  ;;  %1358 = vmatpush3.bf16.msra.mxu1 %v1810_v2  ;;  %v533_v33 = vpop.f32.mrb[35].mxu0 }
 0x127   :  { %v1361_v36 = vpack.c.bf16 %v715_v29, %v714_v31  ;;  %v534_v50 = vadd.f32 %v1747_v8, %v533_v33  ;;  %1360 = vmatprep.subr.bf16.mxu1 %v1774_v58 }
 0x128   :  { %v717_v38 = vmax.f32 %v539_v34, 0.0 }
 0x129   :  { %v716_v41 = vmax.f32 %v534_v50, 0.0  ;;  %v1268_v43 = vpop.f32.mrb[36].mxu0  ;;  %815 = vmatmul.mubr.f32.vlgmr.msra.gmra.mrb[20].mxu1 %v746_v35 }
 0x12a   :  { %v549_v2 = vadd.f32 %v1268_v43, %v1747_v8  ;;  %1362 = vmatpush3.bf16.msra.mxu1 %v1361_v36  ;;  %v543_v45 = vpop.f32.mrb[37].mxu0  ;;  %884 = vmatprep.mubr.f32.mxu1 %v749_v37 }
 0x12b   :  { %v1365_v46 = vpack.c.bf16 %v717_v38, %v716_v41  ;;  %v544_v47 = vadd.f32 %v1747_v8, %v543_v45  ;;  %1364 = vmatprep.subr.bf16.mxu1 %v1782_v9 }
 0x12c   :  { %v719_v48 = vmax.f32 %v549_v2, 0.0 }
 0x12d   :  { %v718_v58 = vmax.f32 %v544_v47, 0.0  ;;  %v1271_v49 = vpop.f32.mrb[38].mxu0 }
 0x12e   :  { %v559_v51 = vadd.f32 %v1271_v49, %v1747_v8  ;;  %1366 = vmatpush3.bf16.msra.mxu1 %v1365_v46  ;;  %v553_v25 = vpop.f32.mrb[39].mxu0 }
 0x12f   :  { %v1369_v52 = vpack.c.bf16 %v719_v48, %v718_v58  ;;  %v554_v54 = vadd.f32 %v1747_v8, %v553_v25  ;;  %1368 = vmatprep.subr.bf16.mxu1 %v1790_v23 }
 0x130   :  { %v721_v55 = vmax.f32 %v559_v51, 0.0 }
 0x131   :  { %v720_v57 = vmax.f32 %v554_v54, 0.0  ;;  %v1274_v59 = vpop.f32.mrb[40].mxu0 }
 0x132   :  { %v569_v60 = vadd.f32 %v1274_v59, %v1747_v8  ;;  %1370 = vmatpush3.bf16.msra.mxu1 %v1369_v52  ;;  %v563_v61 = vpop.f32.mrb[41].mxu0 }
 0x133   :  { %v1373_v9 = vpack.c.bf16 %v721_v55, %v720_v57  ;;  %v564_v62 = vadd.f32 %v1747_v8, %v563_v61  ;;  %1372 = vmatprep.subr.bf16.mxu1 %v1798_v40  ;;  %v890_v40 = vld [vmem:[%s1907_s4] sm:$0xff] }
 0x134   :  { %v723_v39 = vmax.f32 %v569_v60, 0.0 }
 0x135   :  { %v722_v63 = vmax.f32 %v564_v62, 0.0  ;;  %v1277_v0 = vpop.f32.mrb[42].mxu0 }
 0x136   :  { %v579_v1 = vadd.f32 %v1277_v0, %v1747_v8  ;;  %1374 = vmatpush3.bf16.msra.mxu1 %v1373_v9  ;;  %v573_v4 = vpop.f32.mrb[43].mxu0 }
 0x137   :  { %v1377_v23 = vpack.c.bf16 %v723_v39, %v722_v63  ;;  %v574_v5 = vadd.f32 %v1747_v8, %v573_v4  ;;  %1376 = vmatprep.subr.bf16.mxu1 %v1806_v56  ;;  %v748_v8 = vld [vmem:[%s1906_s3 + $0x10] sm:$0xff]  ;;  %v891_v56 = vld [vmem:[%s1907_s4 + $0x8] sm:$0xff] }
 0x138   :  { %v725_v6 = vmax.f32 %v579_v1, 0.0 }
 0x139   :  { %v724_v53 = vmax.f32 %v574_v5, 0.0 }
 0x13a   :  { %1378 = vmatpush3.bf16.msra.mxu1 %v1377_v23 }
 0x13b   :  { %v1381_v7 = vpack.c.bf16 %v725_v6, %v724_v53  ;;  %1380 = vmatprep.subr.bf16.mxu1 %v1814_v10  ;;  %v1431_v10 = vmov 0.0|0.0  }
 0x13e   :  { %1382 = vmatpush3.bf16.msra.mxu1 %v1381_v7 }
 0x13f   :  { %1384 = vmatprep.subr.bf16.mxu1 %v1820_v27  ;;  %v893_v27 = vld [vmem:[%s1907_s4 + $0x18] sm:$0xff] }
 0x142   :  { %1386 = vmatpush3.bf16.msra.mxu1 %v1758_v30  ;;  %v1392_v30 = vpack.c.bf16 %v891_v56, %v890_v40 }
 0x143   :  { %1388 = vmatprep.subr.bf16.mxu1 %v1826_v42 }
 0x146   :  { %1390 = vmatpush3.bf16.msra.mxu1 %v1766_v44  ;;  %v892_v44 = vld [vmem:[%s1907_s4 + $0x10] sm:$0xff]  ;;  %s982_s4 = sshll.u32 %s1434_s26, 4  ;;  %s983_s4 = int_to_ptr.vmem [resolvable:$true] %s982_s4 }
 0x147   :  { %1391 = vmatprep.subr.bf16.mxu1 %v1431_v10  ;;  %v1395_v42 = vpack.c.bf16 %v893_v27, %v892_v44  ;;  %s1407_s27 = scalar_lea.vmem %s983_s4, 128  ;;  %p1412_p1 = scmp.lt.s32.totalorder %s983_s4, %s983_s4 }
 0x148   :  { %p1408_p0 = scmp.ne.s32.totalorder %s983_s4, %s1407_s27  ;;  %p1413_p2 = scmp.lt.s32.totalorder %s1407_s27, %s1407_s27 }
 0x149   :  { %885 = vmatmul.mubr.f32.vlgmr.msra.gmra.mrb[22].mxu1 %v748_v8 }
 0x14a   :  { %1393 = vmatpush3.bf16.msra.mxu1 %v1392_v30  ;;  %1316 = vmatprep.mubr.msk.f32.mxu1 %vm1432_vm2, %v1433_v11  ;;  %p1414_p3 = por %p1413_p2, %p1412_p1 }
 0x14b   :  { %1394 = vmatprep.subr.bf16.mxu1 %v1431_v10 }
 0x14c   :  { %p1415_p4 = pnand %p1414_p3, %p1408_p0 }
 0x14e   :  { %1396 = vmatpush3.bf16.msra.mxu1 %v1395_v42 }
 0x1fc   :  { %v1159_v12 = vpop.f32.mrb[20].mxu1 }
 0x1fd   :  { %v1160_v13 = vpop.f32.mrb[21].mxu1 }
 0x1fe   :  { %v1161_v14 = vadd.f32 %v1160_v13, %v1159_v12 }
 0x21c   :  { %v1194_v15 = vpop.f32.mrb[22].mxu1 }
 0x21d   :  { %v1195_v3 = vpop.f32.mrb[23].mxu1 }
 0x21e   :  { %v1196_v16 = vadd.f32 %v1195_v3, %v1194_v15 }
 0x220   :  { %v887_v17 = vadd.f32 %v1196_v16, %v1161_v14 }
 0x222   :  { %1317 = vmatmul.mubr.msk.f32.vlgmr.msra.gmra.mrb[24].mxu1 %vm901_vm3, %v887_v17 }
 0x2f5   :  { %v971_v20 = vpop.f32.mrb[24].mxu1 }
 0x2f6   :  { %v972_v21 = vadd.f32 %v1056_v19, %v971_v20  ;;  %v1318_v22 = vpop.f32.mrb[25].mxu1 }
 0x2f8   :  { %975 = vst [vmem:[#allocation2] sm:$0xff] %v972_v21 }
 0x2f9   :  { %1418 = shalt.err (!%p1415_p4)
}
 0x2fa   :  { %s1419_s30 = scalar_lea.hbm %s1909_s6, 128 }
 0x2fb   :  { %p1420_p5 = scmp.ne.s32.totalorder %s1909_s6, %s1419_s30  ;;  %p1423_p6 = scmp.lt.u32.totalorder %s1419_s30, %s1909_s6 }
 0x2fd   :  { %p1425_p7 = pnand %p1423_p6, %p1420_p5 }
 0x2ff   :  { %1428 = shalt.err (!%p1425_p7)
}
 0x300   :  { %985 = dma.vmem_to_hbm [thread:$0]  %s983_s4, 128, %s1909_s6, [#allocation3]  }
 0x301   :  { %1429 = dma.done.wait [#allocation3], 128  }
 0x302   :  { %1430 = vsyncadd [#allocation3], 4294967168 }
 0x303   :  { %989 = vsyncpa [#allocation3], 1 }

</bundles_post_ra>
